<compile_context>
chip_gen: v6e
topology: v6e:2x2x1
jax: 0.10.0
libtpu: 0.0.40
codegen_flags: <defaults>
</compile_context>

<pallas_src>
import jax
import jax.numpy as jnp
from jax.experimental import pallas as pl
from jax.experimental.pallas import tpu as pltpu


def actionnet_kernel(x_ref, w1_ref, b1_ref, w2_ref, b2_ref, w3_ref, b3_ref,
                     o_ref):
    x = x_ref[...]                                    # (TM, 3)   f32
    w1 = w1_ref[...]                                  # (3, 128)  f32

    # fc1 + ReLU: K=3 is far too small for the MXU -> 3 VPU FMAs.
    h1 = (x[:, 0:1] * w1[0:1, :]
          + x[:, 1:2] * w1[1:2, :]
          + x[:, 2:3] * w1[2:3, :]
          + b1_ref[...])
    h1 = jnp.maximum(h1, 0.0)                         # (TM, 128) f32

    # fc2 + ReLU: the only real matmul -> bf16 on the MXU, f32 accumulation.
    h2 = jnp.dot(h1.astype(jnp.bfloat16), w2_ref[...],
                 preferred_element_type=jnp.float32)
    h2 = jnp.maximum(h2 + b2_ref[...], 0.0)           # (TM, 128) f32

    # action head (N=1): VPU multiply + cross-lane reduce instead of the MXU.
    a = jnp.sum(h2 * w3_ref[...], axis=-1, keepdims=True)    # (TM, 1)
    a = jnp.tanh(a + b3_ref[0])
    o_ref[...] = (2.0 * a).astype(o_ref.dtype)


def _round_up(n, m):
    return ((n + m - 1) // m) * m


def actionnet_forward(x, w1, b1, w2, b2, w3, b3, *, tm=1024):
    """x: (B, 3) f32.  w1:(3,128)  b1:(1,128)  w2:(128,128)  b2:(1,128)
    w3:(1,128)  b3:(1,).  Returns (B, 1) f32 actions in [-2, 2]."""
    B = x.shape[0]
    tm = min(tm, _round_up(B, 8))          # tile rows, multiple of 8 sublanes
    Bp = _round_up(B, tm)
    if Bp != B:
        x = jnp.pad(x, ((0, Bp - B), (0, 0)))

    out = pl.pallas_call(
        actionnet_kernel,
        out_shape=jax.ShapeDtypeStruct((Bp, 1), jnp.float32),
        grid=(Bp // tm,),
        in_specs=[
            pl.BlockSpec((tm, 3), lambda i: (i, 0)),            # x tile
            pl.BlockSpec((3, 128), lambda i: (0, 0)),           # w1
            pl.BlockSpec((1, 128), lambda i: (0, 0)),           # b1
            pl.BlockSpec((128, 128), lambda i: (0, 0)),         # w2 (bf16)
            pl.BlockSpec((1, 128), lambda i: (0, 0)),           # b2
            pl.BlockSpec((1, 128), lambda i: (0, 0)),           # w3 row
            pl.BlockSpec(memory_space=pltpu.MemorySpace.SMEM),  # b3 scalar
        ],
        out_specs=pl.BlockSpec((tm, 1), lambda i: (i, 0)),
        compiler_params=pltpu.CompilerParams(
            dimension_semantics=("parallel",)),
    )(x, w1, b1, w2.astype(jnp.bfloat16), b2, w3, b3)
    return out[:B]


def init_linear(key, fan_in, fan_out):
    # PyTorch nn.Linear default: U(-1/sqrt(fan_in), 1/sqrt(fan_in)).
    # Stored transposed, (in, out), so the kernel computes x @ W.
    kw, kb = jax.random.split(key)
    bound = 1.0 / jnp.sqrt(jnp.float32(fan_in))
    w = jax.random.uniform(kw, (fan_in, fan_out), jnp.float32, -bound, bound)
    b = jax.random.uniform(kb, (1, fan_out), jnp.float32, -bound, bound)
    return w, b


def reference_forward(x, w1, b1, w2, b2, w3, b3):
    h1 = jnp.maximum(x @ w1 + b1, 0.0)
    h2 = jnp.maximum(h1 @ w2 + b2, 0.0)
    a = jnp.sum(h2 * w3, axis=-1, keepdims=True) + b3[0]
    return 2.0 * jnp.tanh(a)


if __name__ == "__main__":
    key = jax.random.PRNGKey(0)
    kx, k1, k2, k3 = jax.random.split(key, 4)

    B = 50                                   # deliberately not a tile multiple
    x = jax.random.normal(kx, (B, 3), jnp.float32)

    w1, b1 = init_linear(k1, 3, 128)
    w2, b2 = init_linear(k2, 128, 128)
    w3_col, b3_2d = init_linear(k3, 128, 1)
    w3 = w3_col.reshape(1, 128)              # lane-dense row for the VPU dot
    b3 = b3_2d.reshape(1)                    # SMEM scalar

    out = jax.block_until_ready(actionnet_forward(x, w1, b1, w2, b2, w3, b3))

    ref = reference_forward(x, w1, b1, w2, b2, w3, b3)
    assert out.shape == (B, 1)
    # fc2 runs in bf16 on the MXU; allow ~1e-2 absolute slack vs the f32
    # reference (outputs are bounded in [-2, 2]).
    assert jnp.allclose(out, ref, atol=2e-2, rtol=0.0), float(
        jnp.max(jnp.abs(out - ref)))

    print("KERNEL_OK")
</pallas_src>

<mosaic_0001>
module attributes {stable_mosaic.version = 11 : i64} {
  func.func @actionnet_kernel(%arg0: i32, %arg1: memref<56x3xf32, #tpu.memory_space<vmem>>, %arg2: memref<3x128xf32, #tpu.memory_space<vmem>>, %arg3: memref<1x128xf32, #tpu.memory_space<vmem>>, %arg4: memref<128x128xbf16, #tpu.memory_space<vmem>>, %arg5: memref<1x128xf32, #tpu.memory_space<vmem>>, %arg6: memref<1x128xf32, #tpu.memory_space<vmem>>, %arg7: memref<1xf32, #tpu.memory_space<smem>>, %arg8: memref<56x1xf32, #tpu.memory_space<vmem>>) attributes {dimension_semantics = [#tpu.dimension_semantics<parallel>], iteration_bounds = array<i64: 1>, scalar_prefetch = 0 : i64, scratch_operands = 0 : i64, tpu.core_type = #tpu.core_type<tc>, window_params = [{transform_indices = @transform_0, window_bounds = array<i64: 56, 3>}, {pipeline_mode = #tpu.pipeline_mode<synchronous>, transform_indices = @transform_1, window_bounds = array<i64: 3, 128>}, {pipeline_mode = #tpu.pipeline_mode<synchronous>, transform_indices = @transform_2, window_bounds = array<i64: 1, 128>}, {pipeline_mode = #tpu.pipeline_mode<synchronous>, transform_indices = @transform_3, window_bounds = array<i64: 128, 128>}, {pipeline_mode = #tpu.pipeline_mode<synchronous>, transform_indices = @transform_4, window_bounds = array<i64: 1, 128>}, {pipeline_mode = #tpu.pipeline_mode<synchronous>, transform_indices = @transform_5, window_bounds = array<i64: 1, 128>}, {transform_indices = @transform_6, window_bounds = array<i64: 1>}, {transform_indices = @transform_7, window_bounds = array<i64: 56, 1>}]} {
    %c0 = arith.constant 0 : index
    %c0_0 = arith.constant 0 : index
    %0 = vector.load %arg1[%c0, %c0_0] : memref<56x3xf32, #tpu.memory_space<vmem>>, vector<56x3xf32>
    %c0_1 = arith.constant 0 : index
    %c0_2 = arith.constant 0 : index
    %1 = vector.load %arg2[%c0_1, %c0_2] : memref<3x128xf32, #tpu.memory_space<vmem>>, vector<3x128xf32>
    %2 = vector.extract_strided_slice %0 {offsets = [0, 0], sizes = [56, 1], strides = [1, 1]} : vector<56x3xf32> to vector<56x1xf32>
    %3 = vector.extract_strided_slice %1 {offsets = [0, 0], sizes = [1, 128], strides = [1, 1]} : vector<3x128xf32> to vector<1x128xf32>
    %4 = vector.broadcast %2 : vector<56x1xf32> to vector<56x128xf32>
    %5 = vector.broadcast %3 : vector<1x128xf32> to vector<56x128xf32>
    %6 = arith.mulf %4, %5 : vector<56x128xf32>
    %7 = vector.extract_strided_slice %0 {offsets = [0, 1], sizes = [56, 1], strides = [1, 1]} : vector<56x3xf32> to vector<56x1xf32>
    %8 = vector.extract_strided_slice %1 {offsets = [1, 0], sizes = [1, 128], strides = [1, 1]} : vector<3x128xf32> to vector<1x128xf32>
    %9 = vector.broadcast %7 : vector<56x1xf32> to vector<56x128xf32>
    %10 = vector.broadcast %8 : vector<1x128xf32> to vector<56x128xf32>
    %11 = arith.mulf %9, %10 : vector<56x128xf32>
    %12 = arith.addf %6, %11 : vector<56x128xf32>
    %13 = vector.extract_strided_slice %0 {offsets = [0, 2], sizes = [56, 1], strides = [1, 1]} : vector<56x3xf32> to vector<56x1xf32>
    %14 = vector.extract_strided_slice %1 {offsets = [2, 0], sizes = [1, 128], strides = [1, 1]} : vector<3x128xf32> to vector<1x128xf32>
    %15 = vector.broadcast %13 : vector<56x1xf32> to vector<56x128xf32>
    %16 = vector.broadcast %14 : vector<1x128xf32> to vector<56x128xf32>
    %17 = arith.mulf %15, %16 : vector<56x128xf32>
    %18 = arith.addf %12, %17 : vector<56x128xf32>
    %c0_3 = arith.constant 0 : index
    %c0_4 = arith.constant 0 : index
    %19 = vector.load %arg3[%c0_3, %c0_4] : memref<1x128xf32, #tpu.memory_space<vmem>>, vector<1x128xf32>
    %20 = vector.broadcast %19 : vector<1x128xf32> to vector<56x128xf32>
    %21 = arith.addf %18, %20 : vector<56x128xf32>
    %cst = arith.constant 0.000000e+00 : f32
    %22 = vector.broadcast %cst : f32 to vector<56x128xf32>
    %23 = arith.maximumf %21, %22 : vector<56x128xf32>
    %24 = arith.truncf %23 : vector<56x128xf32> to vector<56x128xbf16>
    %c0_5 = arith.constant 0 : index
    %c0_6 = arith.constant 0 : index
    %25 = vector.load %arg4[%c0_5, %c0_6] : memref<128x128xbf16, #tpu.memory_space<vmem>>, vector<128x128xbf16>
    %cst_7 = arith.constant dense<0.000000e+00> : vector<56x128xf32>
    %26 = tpu.matmul %24, %25, %cst_7 {dimension_numbers = #tpu.dot_dimension_numbers<[1], [0], [0], [1], [0, 0, 1, 1], [], []>} : vector<56x128xbf16>, vector<128x128xbf16>, vector<56x128xf32> -> vector<56x128xf32>
    %c0_8 = arith.constant 0 : index
    %c0_9 = arith.constant 0 : index
    %27 = vector.load %arg5[%c0_8, %c0_9] : memref<1x128xf32, #tpu.memory_space<vmem>>, vector<1x128xf32>
    %28 = vector.broadcast %27 : vector<1x128xf32> to vector<56x128xf32>
    %29 = arith.addf %26, %28 : vector<56x128xf32>
    %cst_10 = arith.constant 0.000000e+00 : f32
    %30 = vector.broadcast %cst_10 : f32 to vector<56x128xf32>
    %31 = arith.maximumf %29, %30 : vector<56x128xf32>
    %c0_11 = arith.constant 0 : index
    %c0_12 = arith.constant 0 : index
    %32 = vector.load %arg6[%c0_11, %c0_12] : memref<1x128xf32, #tpu.memory_space<vmem>>, vector<1x128xf32>
    %33 = vector.broadcast %32 : vector<1x128xf32> to vector<56x128xf32>
    %34 = arith.mulf %31, %33 : vector<56x128xf32>
    %cst_13 = arith.constant dense<0.000000e+00> : vector<56xf32>
    %35 = vector.multi_reduction <add>, %34, %cst_13 [1] : vector<56x128xf32> to vector<56xf32>
    %36 = vector.shape_cast %35 : vector<56xf32> to vector<56x1xf32>
    %c0_14 = arith.constant 0 : index
    %37 = memref.load %arg7[%c0_14] : memref<1xf32, #tpu.memory_space<smem>>
    %38 = vector.broadcast %37 : f32 to vector<56x1xf32>
    %39 = arith.addf %36, %38 : vector<56x1xf32>
    %40 = math.tanh %39 : vector<56x1xf32>
    %cst_15 = arith.constant 2.000000e+00 : f32
    %41 = vector.broadcast %cst_15 : f32 to vector<56x1xf32>
    %42 = arith.mulf %41, %40 : vector<56x1xf32>
    %c0_16 = arith.constant 0 : index
    %c0_17 = arith.constant 0 : index
    %43 = vector.load %arg8[%c0_16, %c0_17] : memref<56x1xf32, #tpu.memory_space<vmem>>, vector<56x1xf32>
    tpu.vector_store %arg8[%c0_16, %c0_17], %42 {strides = array<i32>} : memref<56x1xf32, #tpu.memory_space<vmem>>, vector<56x1xf32>,
    return
  }
  func.func @transform_0(%arg0: i32) -> (i32, i32) {
    %c0_i32 = arith.constant 0 : i32
    %c0_i32_0 = arith.constant 0 : i32
    return %arg0, %c0_i32 : i32, i32
  }
  func.func @transform_1(%arg0: i32) -> (i32, i32) {
    %c0_i32 = arith.constant 0 : i32
    %c0_i32_0 = arith.constant 0 : i32
    %c0_i32_1 = arith.constant 0 : i32
    return %c0_i32, %c0_i32_0 : i32, i32
  }
  func.func @transform_2(%arg0: i32) -> (i32, i32) {
    %c0_i32 = arith.constant 0 : i32
    %c0_i32_0 = arith.constant 0 : i32
    %c0_i32_1 = arith.constant 0 : i32
    return %c0_i32, %c0_i32_0 : i32, i32
  }
  func.func @transform_3(%arg0: i32) -> (i32, i32) {
    %c0_i32 = arith.constant 0 : i32
    %c0_i32_0 = arith.constant 0 : i32
    %c0_i32_1 = arith.constant 0 : i32
    return %c0_i32, %c0_i32_0 : i32, i32
  }
  func.func @transform_4(%arg0: i32) -> (i32, i32) {
    %c0_i32 = arith.constant 0 : i32
    %c0_i32_0 = arith.constant 0 : i32
    %c0_i32_1 = arith.constant 0 : i32
    return %c0_i32, %c0_i32_0 : i32, i32
  }
  func.func @transform_5(%arg0: i32) -> (i32, i32) {
    %c0_i32 = arith.constant 0 : i32
    %c0_i32_0 = arith.constant 0 : i32
    %c0_i32_1 = arith.constant 0 : i32
    return %c0_i32, %c0_i32_0 : i32, i32
  }
  func.func @transform_6(%arg0: i32) -> i32 {
    %c0_i32 = arith.constant 0 : i32
    %c0_i32_0 = arith.constant 0 : i32
    return %c0_i32 : i32
  }
  func.func @transform_7(%arg0: i32) -> (i32, i32) {
    %c0_i32 = arith.constant 0 : i32
    %c0_i32_0 = arith.constant 0 : i32
    return %arg0, %c0_i32 : i32, i32
  }
}

</mosaic_0001>

<bundles_post_ra>
// kernel: tpu_custom_call.1
= control target key start
LH: loop header
LB: loop body
LE: loop exit
PB: predicated region body
PF: predicated region fallthrough
CT: control target
= control target key end

     0   :  { %13 = vsyncpa [#allocation4], 0  ;;  %s536_s24 = smov [#allocation3]   ;;  %s673_s0 = inlined_call_operand.vmem [shape: f32[56,3], index: 0, kind: input, shape index: {}]   ;;  %s674_s1 = inlined_call_operand.hbm [shape: f32[3,128], index: 1, kind: input, shape index: {}]   ;;  %s675_s2 = inlined_call_operand.vmem [shape: f32[1,128], index: 2, kind: input, shape index: {}]   ;;  %s676_s3 = inlined_call_operand.vmem [shape: bf16[128,128], index: 3, kind: input, shape index: {}]   ;;  %s677_s4 = inlined_call_operand.vmem [shape: f32[1,128], index: 4, kind: input, shape index: {}]   ;;  %s678_s5 = inlined_call_operand.vmem [shape: f32[1,128], index: 5, kind: input, shape index: {}]   ;;  %s679_s6 = inlined_call_operand.<no memory space> [shape: f32[1], index: 6, kind: input, shape index: {}]   ;;  %s680_s7 = inlined_call_operand.vmem [shape: f32[56,1], index: 7, kind: output, shape index: {}]  }
   0x1   :  { %s22_s25 = sshll.u32 %s536_s24, 4  ;;  %s23_s25 = int_to_ptr.vmem [resolvable:$true] %s22_s25 }
   0x2   :  { %s522_s26 = scalar_lea.vmem %s23_s25, 64  ;;  %p527_p1 = scmp.lt.s32.totalorder %s23_s25, %s23_s25 }
   0x3   :  { %p523_p0 = scmp.ne.s32.totalorder %s23_s25, %s522_s26  ;;  %p528_p2 = scmp.lt.s32.totalorder %s522_s26, %s522_s26 }
   0x5   :  { %p529_p3 = por %p528_p2, %p527_p1 }
   0x7   :  { %p530_p4 = pnand %p529_p3, %p523_p0 }
   0x9   :  { %533 = shalt.err (!%p530_p4)
}
   0xa   :  { %25 = dma.hbm_to_vmem [thread:$0]  %s674_s1, 64, %s23_s25, [#allocation4]  }
   0xb   :  { %534 = dma.done.wait [#allocation4], 64  }
   0xc   :  { %535 = vsyncadd [#allocation4], 4294967232  ;;  %v537_v0 = vmov 0   ;;  %v44_v1 = vld [vmem:[%s673_s0 + $0x20] sm:$0xff]  ;;  %v45_v3 = vld [vmem:[%s673_s0 + $0x28] sm:$0xff]  ;;  %v538_v6 = vmov 1   ;;  %v83_v26 = vlaneseq }
   0xd   :  { %485 = vset.pattern.permute.xlu1 %v537_v0  ;;  %484 = vset.pattern.permute.xlu0 %v537_v0  ;;  %v40_v2 = vld [vmem:[%s673_s0] sm:$0xff]  ;;  %v41_v4 = vld [vmem:[%s673_s0 + $0x8] sm:$0xff]  ;;  %v598_v5 = vld [vmem:[%s673_s0 + $0x18] sm:$0xff]  ;;  %v539_v11 = vmov 2   ;;  %vm404_vm0 = vcmask 7168  }
   0xe   :  { %70 = vperm.xlu1 %485, %v44_v1   ;;  %50 = vperm.xlu0 %484, %v40_v2   ;;  %v42_v7 = vld [vmem:[%s673_s0 + $0x10] sm:$0xff]  ;;  %v492_v8 = vld [vmem:[%s676_s3 + $0x38] sm:$0xff]   ;;  %v494_v12 = vld [vmem:[%s676_s3 + $0x28] sm:$0xff]   ;;  %v84_v29 = vshrl.u32 %v83_v26, 7 }
   0xf   :  { %v46_v9 = vld [vmem:[%s673_s0 + $0x30] sm:$0xff]  ;;  %464 = vmatprep.subr.bf16.mxu1 %v492_v8  ;;  %440 = vmatprep.subr.bf16.mxu0 %v492_v8  ;;  %v495_v13 = vld [vmem:[%s676_s3 + $0x20] sm:$0xff]   ;;  %v496_v14 = vld [vmem:[%s676_s3 + $0x18] sm:$0xff]  }
  0x10   :  { %472 = vmatpush3.bf16.msra.mxu1 %v492_v8  ;;  %441 = vmatpush3.bf16.msra.mxu0 %v492_v8  ;;  %v493_v10 = vld [vmem:[%s676_s3 + $0x30] sm:$0xff]   ;;  %v498_v16 = vld [vmem:[%s676_s3 + $0x8] sm:$0xff]   ;;  %v499_v17 = vld [vmem:[%s676_s3] sm:$0xff]   ;;  %v124_v30 = vsub.s32 1, %v84_v29  ;;  %v85_v33 = vsub.s32 0, %v84_v29  ;;  %v170_v34 = vsub.s32 2, %v84_v29 }
  0x11   :  { %465 = vmatprep.subr.bf16.mxu1 %v493_v10  ;;  %442 = vmatprep.subr.bf16.mxu0 %v493_v10  ;;  %v497_v15 = vld [vmem:[%s676_s3 + $0x10] sm:$0xff]   ;;  %v47_v35 = vld [vmem:[#allocation3] sm:$0x7] }
  0x12   :  { %75 = vperm.xlu1 %485, %v45_v3   ;;  %55 = vperm.xlu0 %484, %v41_v4   ;;  %v125_v36 = vrot.slane %v47_v35, %v124_v30  ;;  %v86_v38 = vrot.slane %v47_v35, %v85_v33  ;;  %v171_v39 = vrot.slane %v47_v35, %v170_v34  ;;  %v417_v53 = vld [vmem:[%s675_s2] ss:$0 sm:$0xff] }
  0x14   :  { %473 = vmatpush3.bf16.msra.mxu1 %v493_v10  ;;  %443 = vmatpush3.bf16.msra.mxu0 %v493_v10 }
  0x15   :  { %466 = vmatprep.subr.bf16.mxu1 %v494_v12  ;;  %444 = vmatprep.subr.bf16.mxu0 %v494_v12 }
  0x16   :  { %486 = vset.pattern.permute.xlu1 %v538_v6  ;;  %65 = vperm.xlu0 %484, %v598_v5  }
  0x17   :  { %99 = vperm.xlu1 %486, %v41_v4  }
  0x18   :  { %474 = vmatpush3.bf16.msra.mxu1 %v494_v12  ;;  %445 = vmatpush3.bf16.msra.mxu0 %v494_v12 }
  0x19   :  { %467 = vmatprep.subr.bf16.mxu1 %v495_v13  ;;  %446 = vmatprep.subr.bf16.mxu0 %v495_v13 }
  0x1a   :  { %488 = vset.pattern.permute.xlu0 %v538_v6 }
  0x1b   :  { %111 = vperm.xlu1 %486, %v44_v1   ;;  %95 = vperm.xlu0 %488, %v40_v2  }
  0x1c   :  { %475 = vmatpush3.bf16.msra.mxu1 %v495_v13  ;;  %447 = vmatpush3.bf16.msra.mxu0 %v495_v13 }
  0x1d   :  { %468 = vmatprep.subr.bf16.mxu1 %v496_v14  ;;  %448 = vmatprep.subr.bf16.mxu0 %v496_v14 }
  0x1f   :  { %487 = vset.pattern.permute.xlu1 %v537_v0  ;;  %115 = vperm.xlu0 %488, %v45_v3  }
  0x20   :  { %60 = vperm.xlu1 %487, %v42_v7   ;;  %476 = vmatpush3.bf16.msra.mxu1 %v496_v14 }
  0x21   :  { %449 = vmatpush3.bf16.msra.mxu0 %v496_v14  ;;  %469 = vmatprep.subr.bf16.mxu1 %v497_v15 }
  0x22   :  { %450 = vmatprep.subr.bf16.mxu0 %v497_v15 }
  0x23   :  { %107 = vperm.xlu0 %488, %v598_v5  }
  0x24   :  { %80 = vperm.xlu1 %487, %v46_v9   ;;  %477 = vmatpush3.bf16.msra.mxu1 %v497_v15 }
  0x25   :  { %451 = vmatpush3.bf16.msra.mxu0 %v497_v15  ;;  %470 = vmatprep.subr.bf16.mxu1 %v498_v16 }
  0x26   :  { %452 = vmatprep.subr.bf16.mxu0 %v498_v16 }
  0x27   :  { %491 = vset.pattern.permute.xlu0 %v539_v11 }
  0x28   :  { %489 = vset.pattern.permute.xlu1 %v538_v6  ;;  %145 = vperm.xlu0 %491, %v41_v4  }
  0x29   :  { %103 = vperm.xlu1 %489, %v42_v7   ;;  %478 = vmatpush3.bf16.msra.mxu1 %v498_v16 }
  0x2a   :  { %453 = vmatpush3.bf16.msra.mxu0 %v498_v16  ;;  %471 = vmatprep.subr.bf16.mxu1 %v499_v17 }
  0x2b   :  { %454 = vmatprep.subr.bf16.mxu0 %v499_v17 }
  0x2c   :  { %149 = vperm.xlu0 %491, %v42_v7  }
  0x2d   :  { %119 = vperm.xlu1 %489, %v46_v9   ;;  %479 = vmatpush3.bf16.msra.mxu1 %v499_v17 }
  0x2e   :  { %455 = vmatpush3.bf16.msra.mxu0 %v499_v17 }
  0x30   :  { %165 = vperm.xlu0 %491, %v46_v9  }
  0x31   :  { %490 = vset.pattern.permute.xlu1 %v539_v11 }
  0x32   :  { %141 = vperm.xlu1 %490, %v40_v2  }
  0x36   :  { %157 = vperm.xlu1 %490, %v44_v1  }
  0x3a   :  { %161 = vperm.xlu1 %490, %v45_v3  }
  0x3e   :  { %153 = vperm.xlu1 %490, %v598_v5  }
  0x89   :  { %v71_v18 = vpop.permute.xlu1 %70  ;;  %v51_v19 = vpop.permute.xlu0 %50 }
  0x8a   :  { %v87_v46 = vmul.f32 %v86_v38, %v51_v19  ;;  %v91_v61 = vmul.f32 %v86_v38, %v71_v18 }
  0x8d   :  { %v76_v20 = vpop.permute.xlu1 %75  ;;  %v56_v21 = vpop.permute.xlu0 %55 }
  0x8e   :  { %v88_v41 = vmul.f32 %v86_v38, %v56_v21  ;;  %v92_v6 = vmul.f32 %v86_v38, %v76_v20 }
  0x91   :  { %v66_v22 = vpop.permute.xlu0 %65 }
  0x92   :  { %v100_v23 = vpop.permute.xlu1 %99  ;;  %v90_v19 = vmul.f32 %v86_v38, %v66_v22 }
  0x93   :  { %v127_v42 = vmul.f32 %v125_v36, %v100_v23 }
  0x95   :  { %v134_v47 = vadd.f32 %v127_v42, %v88_v41 }
  0x96   :  { %v112_v24 = vpop.permute.xlu1 %111  ;;  %v96_v25 = vpop.permute.xlu0 %95 }
  0x97   :  { %v126_v48 = vmul.f32 %v125_v36, %v96_v25  ;;  %v130_v55 = vmul.f32 %v125_v36, %v112_v24 }
  0x99   :  { %v133_v56 = vadd.f32 %v126_v48, %v87_v46  ;;  %v137_v2 = vadd.f32 %v130_v55, %v91_v61 }
  0x9a   :  { %v116_v27 = vpop.permute.xlu0 %115 }
  0x9b   :  { %v61_v28 = vpop.permute.xlu1 %60  ;;  %v131_v3 = vmul.f32 %v125_v36, %v116_v27 }
  0x9c   :  { %v89_v0 = vmul.f32 %v86_v38, %v61_v28 }
  0x9d   :  { %v138_v14 = vadd.f32 %v131_v3, %v92_v6 }
  0x9e   :  { %v108_v31 = vpop.permute.xlu0 %107 }
  0x9f   :  { %v81_v32 = vpop.permute.xlu1 %80  ;;  %v129_v15 = vmul.f32 %v125_v36, %v108_v31 }
  0xa0   :  { %v93_v52 = vmul.f32 %v86_v38, %v81_v32 }
  0xa1   :  { %v136_v26 = vadd.f32 %v129_v15, %v90_v19 }
  0xa3   :  { %v146_v37 = vpop.permute.xlu0 %145 }
  0xa4   :  { %v104_v40 = vpop.permute.xlu1 %103  ;;  %v173_v44 = vmul.f32 %v171_v39, %v146_v37 }
  0xa5   :  { %v128_v58 = vmul.f32 %v125_v36, %v104_v40 }
  0xa6   :  { %v180_v50 = vadd.f32 %v173_v44, %v134_v47 }
  0xa7   :  { %v150_v43 = vpop.permute.xlu0 %149  ;;  %v135_v7 = vadd.f32 %v128_v58, %v89_v0 }
  0xa8   :  { %v120_v45 = vpop.permute.xlu1 %119  ;;  %v194_v63 = vadd.f32 %v417_v53, %v180_v50  ;;  %v174_v9 = vmul.f32 %v171_v39, %v150_v43  ;;  %v427_v50 = vld [vmem:[%s678_s5] ss:$0 sm:$0xff] }
  0xa9   :  { %v132_v49 = vmul.f32 %v125_v36, %v120_v45 }
  0xaa   :  { %v201_v12 = vmax.f32 %v194_v63, 0.0  ;;  %v181_v21 = vadd.f32 %v174_v9, %v135_v7 }
  0xab   :  { %v166_v51 = vpop.permute.xlu0 %165  ;;  %v139_v59 = vadd.f32 %v132_v49, %v93_v52 }
  0xac   :  { %v178_v60 = vmul.f32 %v171_v39, %v166_v51  ;;  %v195_v29 = vadd.f32 %v417_v53, %v181_v21 }
  0xad   :  { %v142_v54 = vpop.permute.xlu1 %141 }
  0xae   :  { %v172_v57 = vmul.f32 %v171_v39, %v142_v54  ;;  %v185_v8 = vadd.f32 %v178_v60, %v139_v59  ;;  %v202_v36 = vmax.f32 %v195_v29, 0.0 }
  0xb0   :  { %v179_v62 = vadd.f32 %v172_v57, %v133_v56  ;;  %v199_v18 = vadd.f32 %v417_v53, %v185_v8 }
  0xb1   :  { %v158_v1 = vpop.permute.xlu1 %157 }
  0xb2   :  { %v176_v4 = vmul.f32 %v171_v39, %v158_v1  ;;  %v193_v5 = vadd.f32 %v417_v53, %v179_v62  ;;  %v206_v28 = vmax.f32 %v199_v18, 0.0 }
  0xb4   :  { %v183_v10 = vadd.f32 %v176_v4, %v137_v2  ;;  %v200_v11 = vmax.f32 %v193_v5, 0.0  ;;  %v210_v31 = vpack.c.bf16 %v206_v28, %v206_v28  ;;  %v382_v5 = vstv %s679_s6 }
  0xb5   :  { %v162_v13 = vpop.permute.xlu1 %161 }
  0xb6   :  { %v177_v16 = vmul.f32 %v171_v39, %v162_v13  ;;  %v207_v17 = vpack.c.bf16 %v201_v12, %v200_v11  ;;  %v197_v24 = vadd.f32 %v417_v53, %v183_v10 }
  0xb8   :  { %v184_v23 = vadd.f32 %v177_v16, %v138_v14  ;;  %456 = vmatprep.mubr.bf16.mxu0 %v207_v17  ;;  %v204_v32 = vmax.f32 %v197_v24, 0.0 }
  0xb9   :  { %v154_v25 = vpop.permute.xlu1 %153 }
  0xba   :  { %v175_v20 = vmul.f32 %v171_v39, %v154_v25  ;;  %v198_v27 = vadd.f32 %v417_v53, %v184_v23  ;;  %v418_v39 = vld [vmem:[%s677_s4] ss:$0 sm:$0xff] }
  0xbc   :  { %v182_v30 = vadd.f32 %v175_v20, %v136_v26  ;;  %v205_v33 = vmax.f32 %v198_v27, 0.0 }
  0xbe   :  { %v196_v34 = vadd.f32 %v417_v53, %v182_v30  ;;  %v209_v35 = vpack.c.bf16 %v205_v33, %v204_v32 }
  0xc0   :  { %v203_v37 = vmax.f32 %v196_v34, 0.0  ;;  %460 = vmatprep.mubr.bf16.mxu1 %v209_v35 }
  0xc1   :  { %461 = vmatmul.mubr.bf16.vlgmr.msra.gmra.mxu1 %v210_v31 }
  0xc2   :  { %v208_v22 = vpack.c.bf16 %v203_v37, %v202_v36 }
  0xc4   :  { %457 = vmatmul.mubr.bf16.vlgmr.msra.gmra.mxu0 %v208_v22 }
 0x181   :  { %v462_v38 = vpop.f32.mrf.mxu1 }
 0x182   :  { %v341_v60 = vadd.f32 %v462_v38, %v418_v39 }
 0x183   :  { %v332_v40 = vpop.f32.mrf.mxu1 }
 0x184   :  { %v458_v41 = vpop.f32.mrf.mxu0  ;;  %v333_v42 = vadd.f32 %v418_v39, %v332_v40  ;;  %v352_v1 = vmax.f32 %v341_v60, 0.0 }
 0x185   :  { %v325_v43 = vadd.f32 %v458_v41, %v418_v39  ;;  %v463_v44 = vpop.f32.mrf.mxu1 }
 0x186   :  { %v316_v45 = vpop.f32.mrf.mxu0  ;;  %v350_v51 = vmax.f32 %v333_v42, 0.0  ;;  %v366_v4 = vmul.f32 %v427_v50, %v352_v1 }
 0x187   :  { %v348_v46 = vmax.f32 %v325_v43, 0.0  ;;  %v317_v47 = vadd.f32 %v418_v39, %v316_v45  ;;  %v335_v48 = vpop.f32.mrf.mxu1 }
 0x188   :  { %v459_v49 = vpop.f32.mrf.mxu0  ;;  %v336_v56 = vadd.f32 %v418_v39, %v335_v48  ;;  %v364_v62 = vmul.f32 %v427_v50, %v350_v51 }
 0x189   :  { %v346_v52 = vmax.f32 %v317_v47, 0.0  ;;  %v328_v53 = vadd.f32 %v459_v49, %v418_v39  ;;  %v362_v54 = vmul.f32 %v427_v50, %v348_v46 }
 0x18a   :  { %v319_v55 = vpop.f32.mrf.mxu0  ;;  %v351_v63 = vmax.f32 %v336_v56, 0.0 }
 0x18b   :  { %v349_v57 = vmax.f32 %v328_v53, 0.0  ;;  %v320_v58 = vadd.f32 %v418_v39, %v319_v55  ;;  %371 = vadd.xlane.f32.xlu0 %v362_v54  ;;  %v360_v59 = vmul.f32 %v427_v50, %v346_v52 }
 0x18c   :  { %v365_v3 = vmul.f32 %v427_v50, %v351_v63 }
 0x18d   :  { %v347_v61 = vmax.f32 %v320_v58, 0.0  ;;  %367 = vadd.xlane.f32.xlu1 %v360_v59  ;;  %v363_v0 = vmul.f32 %v427_v50, %v349_v57 }
 0x18f   :  { %375 = vadd.xlane.f32.xlu0 %v364_v62  ;;  %v361_v2 = vmul.f32 %v427_v50, %v347_v61 }
 0x191   :  { %373 = vadd.xlane.f32.xlu1 %v363_v0 }
 0x193   :  { %369 = vadd.xlane.f32.xlu0 %v361_v2 }
 0x195   :  { %377 = vadd.xlane.f32.xlu1 %v365_v3 }
 0x197   :  { %379 = vadd.xlane.f32.xlu0 %v366_v4 }
 0x214   :  { %v372_v6 = vpop.xlane.xlu0 %371 }
 0x215   :  { %v385_v7 = vadd.f32 %v382_v5, %v372_v6 }
 0x216   :  { %v368_v8 = vpop.xlane.xlu1 %367 }
 0x217   :  { %500 = vtanh.f32 %v385_v7  ;;  %v383_v9 = vadd.f32 %v382_v5, %v368_v8 }
 0x218   :  { %v376_v10 = vpop.xlane.xlu0 %375 }
 0x219   :  { %502 = vtanh.f32 %v383_v9  ;;  %v387_v11 = vadd.f32 %v382_v5, %v376_v10 }
 0x21a   :  { %v374_v12 = vpop.xlane.xlu1 %373 }
 0x21b   :  { %504 = vtanh.f32 %v387_v11  ;;  %v386_v13 = vadd.f32 %v382_v5, %v374_v12 }
 0x21c   :  { %v370_v14 = vpop.xlane.xlu0 %369 }
 0x21d   :  { %506 = vtanh.f32 %v386_v13  ;;  %v384_v15 = vadd.f32 %v382_v5, %v370_v14 }
 0x21e   :  { %v378_v16 = vpop.xlane.xlu1 %377 }
 0x21f   :  { %508 = vtanh.f32 %v384_v15  ;;  %v388_v17 = vadd.f32 %v382_v5, %v378_v16 }
 0x220   :  { %v380_v18 = vpop.xlane.xlu0 %379 }
 0x221   :  { %510 = vtanh.f32 %v388_v17  ;;  %v389_v19 = vadd.f32 %v382_v5, %v380_v18 }
 0x223   :  { %512 = vtanh.f32 %v389_v19 }
 0x224   :  { %v501_v21 = vpop.eup %500 }
 0x225   :  { %v399_v23 = vmul.f32 2.0, %v501_v21 }
 0x226   :  { %v503_v24 = vpop.eup %502 }
 0x227   :  { %407 = vst.msk [vmem:[%s680_s7 + $0x10] sm:$0xff] %vm404_vm0, %v399_v23  ;;  %v397_v25 = vmul.f32 2.0, %v503_v24 }
 0x228   :  { %v505_v26 = vpop.eup %504 }
 0x229   :  { %405 = vst.msk [vmem:[%s680_s7] sm:$0xff] %vm404_vm0, %v397_v25  ;;  %v401_v20 = vmul.f32 2.0, %v505_v26 }
 0x22a   :  { %v507_v27 = vpop.eup %506 }
 0x22b   :  { %409 = vst.msk [vmem:[%s680_s7 + $0x20] sm:$0xff] %vm404_vm0, %v401_v20  ;;  %v400_v28 = vmul.f32 2.0, %v507_v27 }
 0x22c   :  { %v509_v29 = vpop.eup %508 }
 0x22d   :  { %408 = vst.msk [vmem:[%s680_s7 + $0x18] sm:$0xff] %vm404_vm0, %v400_v28  ;;  %v398_v30 = vmul.f32 2.0, %v509_v29 }
 0x22e   :  { %v511_v32 = vpop.eup %510 }
 0x22f   :  { %406 = vst.msk [vmem:[%s680_s7 + $0x8] sm:$0xff] %vm404_vm0, %v398_v30  ;;  %v402_v33 = vmul.f32 2.0, %v511_v32 }
 0x230   :  { %v513_v34 = vpop.eup %512 }
 0x231   :  { %410 = vst.msk [vmem:[%s680_s7 + $0x28] sm:$0xff] %vm404_vm0, %v402_v33  ;;  %v403_v35 = vmul.f32 2.0, %v513_v34 }
 0x233   :  { %411 = vst.msk [vmem:[%s680_s7 + $0x30] sm:$0xff] %vm404_vm0, %v403_v35 }
 0x234   :  { %416 = vsyncpa [#allocation4], 1 }

</bundles_post_ra>
